<compile_context>
chip_gen: v7x
topology: tpu7x:2x2x1
jax: 0.10.0
libtpu: 0.0.40
codegen_flags: <defaults>
</compile_context>

<pallas_src>
import jax
import jax.numpy as jnp
from jax.experimental import pallas as pl
from jax.experimental.pallas import tpu as pltpu


def _round_up(x, m):
    return ((x + m - 1) // m) * m


# ----------------------------------------------------------------------------
# Kernel: one (T, T) tile of both cosine graphs + squared-diff accumulation
# ----------------------------------------------------------------------------
def _cos_graph_mse_kernel(pq_ref, pk_ref, sq_ref, sk_ref, out_ref, acc_ref):
    i = pl.program_id(1)
    j = pl.program_id(2)
    ni = pl.num_programs(1)
    nj = pl.num_programs(2)

    @pl.when((i == 0) & (j == 0))
    def _init():
        acc_ref[...] = jnp.zeros_like(acc_ref)

    def cos_graph_tile(q_ref, k_ref):
        q = q_ref[0]                                                  # (T, Cp)
        k = k_ref[0]                                                  # (Cp, T)
        energy = jnp.dot(q, k, preferred_element_type=jnp.float32)    # (T, T)
        qn = jnp.sqrt(jnp.sum(q * q, axis=1, keepdims=True))          # (T, 1)
        kn = jnp.sqrt(jnp.sum(k * k, axis=0, keepdims=True))          # (1, T)
        return energy / (qn * kn + 1e-6)

    gs = cos_graph_tile(pq_ref, pk_ref)
    gt = cos_graph_tile(sq_ref, sk_ref)
    d = gs - gt
    acc_ref[...] += jnp.sum(d * d, keepdims=True)

    @pl.when((i == ni - 1) & (j == nj - 1))
    def _finalize():
        out_ref[0] = acc_ref[...]


# ----------------------------------------------------------------------------
# Wrapper: sum over (b, i, j) of (G_preds - G_soft)^2 via the Pallas kernel
# ----------------------------------------------------------------------------
def cos_graph_mse_sum(preds, soft):
    Bp, _, Wp, Hp = preds.shape
    Bs, _, Ws, Hs = soft.shape
    B, N = Bp, Wp * Hp
    assert Bs == B and Ws * Hs == N, (preds.shape, soft.shape)

    tile = 256 if N >= 512 else 128          # bigger tiles amortize grid-step overhead
    Np = _round_up(max(N, tile), tile)

    def prep(x):
        b, c, w, h = x.shape
        cpad = _round_up(c, 8)
        xf = x.reshape(b, c, w * h).astype(jnp.float32)
        xf = jnp.pad(xf, ((0, 0), (0, cpad - c), (0, Np - w * h)))
        # (B, Np, Cp) for the query side, (B, Cp, Np) for the key side.
        return jnp.transpose(xf, (0, 2, 1)), xf, cpad

    pq, pk, cp = prep(preds)
    sq, sk, cs = prep(soft)

    nt = Np // tile
    grid = (B, nt, nt)

    out = pl.pallas_call(
        _cos_graph_mse_kernel,
        out_shape=jax.ShapeDtypeStruct((B, 1, 1), jnp.float32),
        grid_spec=pltpu.PrefetchScalarGridSpec(
            num_scalar_prefetch=0,
            grid=grid,
            in_specs=[
                pl.BlockSpec((1, tile, cp), lambda b, i, j: (b, i, 0)),
                pl.BlockSpec((1, cp, tile), lambda b, i, j: (b, 0, j)),
                pl.BlockSpec((1, tile, cs), lambda b, i, j: (b, i, 0)),
                pl.BlockSpec((1, cs, tile), lambda b, i, j: (b, 0, j)),
            ],
            out_specs=pl.BlockSpec((1, 1, 1), lambda b, i, j: (b, 0, 0)),
            scratch_shapes=[pltpu.VMEM((1, 1), jnp.float32)],
        ),
        compiler_params=pltpu.CompilerParams(
            dimension_semantics=("parallel", "arbitrary", "arbitrary"),
            vmem_limit_bytes=32 * 1024 * 1024,
        ),
    )(pq, pk, sq, sk)

    return jnp.sum(out)


def criterion_sdcos_no(preds, soft):
    """CriterionSDcos_no.forward: MSE between the two cosine-similarity graphs."""
    Bp, _, Wp, Hp = preds.shape
    Bs, _, Ws, Hs = soft.shape
    if (Bp, Wp * Hp) != (Bs, Ws * Hs):
        # PyTorch fallback branch: MSELoss(graph_s, graph_s) == 0.
        print('shape dismatch')
        return jnp.float32(0.0)
    N = Wp * Hp
    total = cos_graph_mse_sum(preds, soft)
    return total / jnp.float32(Bp * N * N)


if __name__ == "__main__":
    key = jax.random.PRNGKey(0)
    kp, ks = jax.random.split(key)
    preds = jax.random.normal(kp, (2, 4, 16, 16), jnp.float32)
    soft = jax.random.normal(ks, (2, 4, 16, 16), jnp.float32)

    loss_fn = jax.jit(criterion_sdcos_no)
    loss = loss_fn(preds, soft)
    jax.block_until_ready(loss)

    # Plain-JAX reference of the original module for a sanity check.
    def _ref_graph(x):
        b, c, w, h = x.shape
        xf = x.reshape(b, c, w * h)
        q = jnp.transpose(xf, (0, 2, 1))
        qn = jnp.sqrt(jnp.sum(q * q, axis=2))
        nm = qn[:, :, None] * qn[:, None, :]
        energy = jnp.einsum('bnc,bcm->bnm', q, xf)
        return energy / (nm + 1e-6)

    ref = jnp.mean((_ref_graph(preds) - _ref_graph(soft)) ** 2)

    assert loss.shape == (), loss.shape
    assert bool(jnp.isfinite(loss))
    rel = abs(float(loss) - float(ref)) / max(abs(float(ref)), 1e-6)
    assert rel < 1e-2, (float(loss), float(ref))
    print("KERNEL_OK")
</pallas_src>

<mosaic_0001>
module attributes {stable_mosaic.version = 11 : i64} {
  func.func @_cos_graph_mse_kernel(%arg0: i32, %arg1: i32, %arg2: i32, %arg3: memref<1x128x8xf32, #tpu.memory_space<vmem>>, %arg4: memref<1x8x128xf32, #tpu.memory_space<vmem>>, %arg5: memref<1x128x8xf32, #tpu.memory_space<vmem>>, %arg6: memref<1x8x128xf32, #tpu.memory_space<vmem>>, %arg7: memref<1x1x1xf32, #tpu.memory_space<vmem>>, %arg8: memref<1x1xf32, #tpu.memory_space<vmem>>) attributes {dimension_semantics = [#tpu.dimension_semantics<parallel>, #tpu.dimension_semantics<arbitrary>, #tpu.dimension_semantics<arbitrary>], iteration_bounds = array<i64: 2, 2, 2>, scalar_prefetch = 0 : i64, scratch_operands = 1 : i64, tpu.core_type = #tpu.core_type<tc>, window_params = [{transform_indices = @transform_0, window_bounds = array<i64: 1, 128, 8>}, {transform_indices = @transform_1, window_bounds = array<i64: 1, 8, 128>}, {transform_indices = @transform_2, window_bounds = array<i64: 1, 128, 8>}, {transform_indices = @transform_3, window_bounds = array<i64: 1, 8, 128>}, {transform_indices = @transform_4, window_bounds = array<i64: 1, 1, 1>}]} {
    %c0_i32 = arith.constant 0 : i32
    %0 = arith.cmpi eq, %arg1, %c0_i32 : i32
    %c0_i32_0 = arith.constant 0 : i32
    %1 = arith.cmpi eq, %arg2, %c0_i32_0 : i32
    %2 = arith.andi %0, %1 : i1
    %3 = arith.extui %2 : i1 to i32
    %c0_i32_1 = arith.constant 0 : i32
    %4 = arith.cmpi ne, %3, %c0_i32_1 : i32
    scf.if %4 {
      %cst_27 = arith.constant 0.000000e+00 : f32
      %58 = vector.broadcast %cst_27 : f32 to vector<1x1xf32>
      %c0_28 = arith.constant 0 : index
      %c0_29 = arith.constant 0 : index
      %59 = vector.load %arg8[%c0_28, %c0_29] : memref<1x1xf32, #tpu.memory_space<vmem>>, vector<1x1xf32>
      tpu.vector_store %arg8[%c0_28, %c0_29], %58 {strides = array<i32>} : memref<1x1xf32, #tpu.memory_space<vmem>>, vector<1x1xf32>,
    } else {
    }
    %c0 = arith.constant 0 : index
    %c0_2 = arith.constant 0 : index
    %c0_3 = arith.constant 0 : index
    %5 = vector.load %arg3[%c0, %c0_2, %c0_3] : memref<1x128x8xf32, #tpu.memory_space<vmem>>, vector<1x128x8xf32>
    %6 = vector.shape_cast %5 : vector<1x128x8xf32> to vector<128x8xf32>
    %c0_4 = arith.constant 0 : index
    %c0_5 = arith.constant 0 : index
    %c0_6 = arith.constant 0 : index
    %7 = vector.load %arg4[%c0_4, %c0_5, %c0_6] : memref<1x8x128xf32, #tpu.memory_space<vmem>>, vector<1x8x128xf32>
    %8 = vector.shape_cast %7 : vector<1x8x128xf32> to vector<8x128xf32>
    %cst = arith.constant dense<0.000000e+00> : vector<128x128xf32>
    %9 = tpu.matmul %6, %8, %cst {dimension_numbers = #tpu.dot_dimension_numbers<[1], [0], [0], [1], [0, 0, 1, 1], [], []>} : vector<128x8xf32>, vector<8x128xf32>, vector<128x128xf32> -> vector<128x128xf32>
    %10 = arith.mulf %6, %6 : vector<128x8xf32>
    %cst_7 = arith.constant dense<0.000000e+00> : vector<128xf32>
    %11 = vector.multi_reduction <add>, %10, %cst_7 [1] : vector<128x8xf32> to vector<128xf32>
    %12 = vector.shape_cast %11 : vector<128xf32> to vector<128x1xf32>
    %13 = math.sqrt %12 : vector<128x1xf32>
    %14 = arith.mulf %8, %8 : vector<8x128xf32>
    %cst_8 = arith.constant dense<0.000000e+00> : vector<128xf32>
    %15 = vector.multi_reduction <add>, %14, %cst_8 [0] : vector<8x128xf32> to vector<128xf32>
    %16 = vector.shape_cast %15 : vector<128xf32> to vector<1x128xf32>
    %17 = math.sqrt %16 : vector<1x128xf32>
    %18 = vector.broadcast %13 : vector<128x1xf32> to vector<128x128xf32>
    %19 = vector.broadcast %17 : vector<1x128xf32> to vector<128x128xf32>
    %20 = arith.mulf %18, %19 : vector<128x128xf32>
    %cst_9 = arith.constant 9.99999997E-7 : f32
    %21 = vector.broadcast %cst_9 : f32 to vector<128x128xf32>
    %22 = arith.addf %20, %21 : vector<128x128xf32>
    %23 = arith.divf %9, %22 : vector<128x128xf32>
    %c0_10 = arith.constant 0 : index
    %c0_11 = arith.constant 0 : index
    %c0_12 = arith.constant 0 : index
    %24 = vector.load %arg5[%c0_10, %c0_11, %c0_12] : memref<1x128x8xf32, #tpu.memory_space<vmem>>, vector<1x128x8xf32>
    %25 = vector.shape_cast %24 : vector<1x128x8xf32> to vector<128x8xf32>
    %c0_13 = arith.constant 0 : index
    %c0_14 = arith.constant 0 : index
    %c0_15 = arith.constant 0 : index
    %26 = vector.load %arg6[%c0_13, %c0_14, %c0_15] : memref<1x8x128xf32, #tpu.memory_space<vmem>>, vector<1x8x128xf32>
    %27 = vector.shape_cast %26 : vector<1x8x128xf32> to vector<8x128xf32>
    %cst_16 = arith.constant dense<0.000000e+00> : vector<128x128xf32>
    %28 = tpu.matmul %25, %27, %cst_16 {dimension_numbers = #tpu.dot_dimension_numbers<[1], [0], [0], [1], [0, 0, 1, 1], [], []>} : vector<128x8xf32>, vector<8x128xf32>, vector<128x128xf32> -> vector<128x128xf32>
    %29 = arith.mulf %25, %25 : vector<128x8xf32>
    %cst_17 = arith.constant dense<0.000000e+00> : vector<128xf32>
    %30 = vector.multi_reduction <add>, %29, %cst_17 [1] : vector<128x8xf32> to vector<128xf32>
    %31 = vector.shape_cast %30 : vector<128xf32> to vector<128x1xf32>
    %32 = math.sqrt %31 : vector<128x1xf32>
    %33 = arith.mulf %27, %27 : vector<8x128xf32>
    %cst_18 = arith.constant dense<0.000000e+00> : vector<128xf32>
    %34 = vector.multi_reduction <add>, %33, %cst_18 [0] : vector<8x128xf32> to vector<128xf32>
    %35 = vector.shape_cast %34 : vector<128xf32> to vector<1x128xf32>
    %36 = math.sqrt %35 : vector<1x128xf32>
    %37 = vector.broadcast %32 : vector<128x1xf32> to vector<128x128xf32>
    %38 = vector.broadcast %36 : vector<1x128xf32> to vector<128x128xf32>
    %39 = arith.mulf %37, %38 : vector<128x128xf32>
    %cst_19 = arith.constant 9.99999997E-7 : f32
    %40 = vector.broadcast %cst_19 : f32 to vector<128x128xf32>
    %41 = arith.addf %39, %40 : vector<128x128xf32>
    %42 = arith.divf %28, %41 : vector<128x128xf32>
    %43 = arith.subf %23, %42 : vector<128x128xf32>
    %c0_20 = arith.constant 0 : index
    %c0_21 = arith.constant 0 : index
    %44 = vector.load %arg8[%c0_20, %c0_21] : memref<1x1xf32, #tpu.memory_space<vmem>>, vector<1x1xf32>
    %45 = arith.mulf %43, %43 : vector<128x128xf32>
    %46 = vector.shape_cast %45 : vector<128x128xf32> to vector<1x128x128xf32>
    %cst_22 = arith.constant dense<0.000000e+00> : vector<1xf32>
    %47 = vector.multi_reduction <add>, %46, %cst_22 [1, 2] : vector<1x128x128xf32> to vector<1xf32>
    %48 = vector.shape_cast %47 : vector<1xf32> to vector<1x1x1xf32>
    %49 = vector.extract %48[0, 0, 0] : f32 from vector<1x1x1xf32>
    %50 = vector.broadcast %49 : f32 to vector<1x1xf32>
    %51 = arith.addf %44, %50 : vector<1x1xf32>
    %c0_23 = arith.constant 0 : index
    %c0_24 = arith.constant 0 : index
    %52 = vector.load %arg8[%c0_23, %c0_24] : memref<1x1xf32, #tpu.memory_space<vmem>>, vector<1x1xf32>
    tpu.vector_store %arg8[%c0_23, %c0_24], %51 {strides = array<i32>} : memref<1x1xf32, #tpu.memory_space<vmem>>, vector<1x1xf32>,
    %c1_i32 = arith.constant 1 : i32
    %53 = arith.cmpi eq, %arg1, %c1_i32 : i32
    %c1_i32_25 = arith.constant 1 : i32
    %54 = arith.cmpi eq, %arg2, %c1_i32_25 : i32
    %55 = arith.andi %53, %54 : i1
    %56 = arith.extui %55 : i1 to i32
    %c0_i32_26 = arith.constant 0 : i32
    %57 = arith.cmpi ne, %56, %c0_i32_26 : i32
    scf.if %57 {
      %c0_27 = arith.constant 0 : index
      %c0_28 = arith.constant 0 : index
      %58 = vector.load %arg8[%c0_27, %c0_28] : memref<1x1xf32, #tpu.memory_space<vmem>>, vector<1x1xf32>
      %c0_29 = arith.constant 0 : index
      %c0_30 = arith.constant 0 : index
      %c0_31 = arith.constant 0 : index
      %59 = vector.load %arg7[%c0_29, %c0_30, %c0_31] : memref<1x1x1xf32, #tpu.memory_space<vmem>>, vector<1x1x1xf32>
      %60 = vector.shape_cast %59 : vector<1x1x1xf32> to vector<1x1xf32>
      %61 = vector.shape_cast %58 : vector<1x1xf32> to vector<1x1x1xf32>
      tpu.vector_store %arg7[%c0_29, %c0_30, %c0_31], %61 {strides = array<i32>} : memref<1x1x1xf32, #tpu.memory_space<vmem>>, vector<1x1x1xf32>,
    } else {
    }
    return
  }
  func.func @transform_0(%arg0: i32, %arg1: i32, %arg2: i32) -> (i32, i32, i32) {
    %c0_i32 = arith.constant 0 : i32
    %c0_i32_0 = arith.constant 0 : i32
    return %arg0, %arg1, %c0_i32 : i32, i32, i32
  }
  func.func @transform_1(%arg0: i32, %arg1: i32, %arg2: i32) -> (i32, i32, i32) {
    %c0_i32 = arith.constant 0 : i32
    %c0_i32_0 = arith.constant 0 : i32
    return %arg0, %c0_i32, %arg2 : i32, i32, i32
  }
  func.func @transform_2(%arg0: i32, %arg1: i32, %arg2: i32) -> (i32, i32, i32) {
    %c0_i32 = arith.constant 0 : i32
    %c0_i32_0 = arith.constant 0 : i32
    return %arg0, %arg1, %c0_i32 : i32, i32, i32
  }
  func.func @transform_3(%arg0: i32, %arg1: i32, %arg2: i32) -> (i32, i32, i32) {
    %c0_i32 = arith.constant 0 : i32
    %c0_i32_0 = arith.constant 0 : i32
    return %arg0, %c0_i32, %arg2 : i32, i32, i32
  }
  func.func @transform_4(%arg0: i32, %arg1: i32, %arg2: i32) -> (i32, i32, i32) {
    %c0_i32 = arith.constant 0 : i32
    %c0_i32_0 = arith.constant 0 : i32
    %c0_i32_1 = arith.constant 0 : i32
    return %arg0, %c0_i32, %c0_i32_0 : i32, i32, i32
  }
}

</mosaic_0001>

<bundles_post_ra>
// kernel: criterion_sdcos_no.1
= control target key start
LH: loop header
LB: loop body
LE: loop exit
PB: predicated region body
PF: predicated region fallthrough
CT: control target
= control target key end

     0   :  { %s1865_s15 = smov 0   ;;  %s1867_s16 = smov 0   ;;  %s2642_s0 = inlined_call_operand.vmem [shape: f32[2,256,8], index: 0, kind: input, shape index: {}]   ;;  %s2643_s1 = inlined_call_operand.vmem [shape: f32[2,8,256], index: 1, kind: input, shape index: {}]   ;;  %s2644_s2 = inlined_call_operand.vmem [shape: f32[2,256,8], index: 2, kind: input, shape index: {}]   ;;  %s2645_s3 = inlined_call_operand.vmem [shape: f32[2,8,256], index: 3, kind: input, shape index: {}]   ;;  %s2646_s4 = inlined_call_operand.vmem [shape: f32[2,1,1], index: 4, kind: output, shape index: {}]  }
   0x1   :  { %s1869_s17 = smov 0   ;;  %s1871_s18 = smov 0  }
   0x2   :  { %s1873_s19 = smov 0   ;;  %s1875_s20 = smov 0  }
   0x3   :  { %s1877_s21 = smov 0  }
   0x4 LB: > { %s26_s22 = sadd.s32 1, %s1825_s18  ;;  %s29_s23 = sadd.s32 1, %s1829_s19  ;;  %s1837_s21 = sphi %s1877_s21, %s14_s21   ;;  %s1833_s20 = sphi %s1875_s20, %s2660_s20   ;;  %s1829_s19 = sphi %s1873_s19, %s2659_s19   ;;  %s1825_s18 = sphi %s1871_s18, %s2658_s18   ;;  %s1821_s17 = sphi %s1869_s17, %s2657_s17   ;;  %s1817_s16 = sphi %s1867_s16, %s2656_s16   ;;  %s1813_s15 = sphi %s1865_s15, %s2655_s15  }
   0x5   : > { %p27_p0 = scmp.ge.s32.totalorder %s26_s22, 2  ;;  %p1461_p1 = scmp.ge.s32.totalorder %s1837_s21, 1 }
   0x6   : > { %p235_p2 = scmp.lt.s32.totalorder %s1837_s21, 9  ;;  %s33_s24 = sadd.s32 1, %s1833_s20 }
   0x7   : > { %s2662_s22 = smov (%p27_p0, %s26_s22), 0  ;;  %s2664_s23 = smov (!%p27_p0, %s29_s23), %s1829_s19 }
   0x8   : > { %p236_p3 = pnand %p1461_p1, %p235_p2  ;;  %p31_p4 = scmp.ge.s32.totalorder %s2664_s23, 2 }
   0x9   : > { %s1462_s25 = sshll.u32 (!%p236_p3), %s1817_s16, 4  ;;  %p289_p6 = scmp.lt.s32.totalorder (!%p236_p3), %s1821_s17, 1 }
   0xa   : > { %s2666_s23 = smov (%p31_p4, %s2664_s23), 0  ;;  %s2668_s24 = smov (!%p31_p4, %s33_s24), %s1833_s20 }
   0xb   : > { %p35_p5 = scmp.ge.s32.totalorder %s2668_s24, 2  ;;  %239 = sbr.rel (%p236_p3) target bundleno = 518 (0x206), region = 36 }
   0xc   : > { %p291_p7 = scmp.lt.s32.totalorder (!%p236_p3), %s1462_s25, 31  ;;  %p300_p8 = scmp.lt.s32.totalorder (!%p236_p3), %s1813_s15, 1 }
   0xd   : > { %s2670_s24 = smov (%p35_p5, %s2668_s24), 0  ;;  %p327_p9 = scmp.eq.s32.totalorder (!%p236_p3), %s1817_s16, 0 }
   0xe   : > { %p328_p10 = scmp.eq.s32.totalorder (!%p236_p3), %s1813_s15, 0 }
  0x10   : > { %p329_p11 = pnand (!%p236_p3), %p328_p10, %p327_p9 }
  0x12   : > { %s2672_s17 = smov (!%p289_p6, %s1821_s17), 1  ;;  %s2674_s25 = smov (!%p291_p7, %s1462_s25), 31 }
  0x13   : > { %s1463_s26 = sshll.u32 %s2672_s17, 5  ;;  %s1465_s27 = sshll.u32 %s2672_s17, 1  ;;  %vm333_vm0 = vcmask (!%p329_p11), 0   ;;  %v1839_v0 = vmov (!%p329_p11), 0.0  }
  0x14   : > { %s294_s28 = sadd.s32 %s1463_s26, %s2674_s25  ;;  %334 = vst.msk [vmem:[#allocation2] sm:$0x1] (!%p329_p11), %vm333_vm0, %v1839_v0 }
  0x15   : > { %s1464_s6 = sshll.u32 %s294_s28, 3  ;;  %332 = sbr.rel (%p329_p11) target bundleno = 28 (0x1c), region = 40 }
  0x16   : > { %s1925_s9 = scalar_lea.vmem %s2642_s0, %s1464_s6  ;;  %s1930_s12 = scalar_lea.vmem %s2644_s2, %s1464_s6 }
  0x17   : > { %s301_s13 = scalar_select %p300_p8, %s1813_s15, 1 }
  0x19   : > { %s303_s14 = sadd.s32 %s1465_s27, %s301_s13 }
  0x1a   : > { %s1466_s25 = sshll.u32 %s303_s14, 3 }
  0x1b   : > { %s305_s28 = scalar_lea.vmem %s2643_s1, %s1466_s25  ;;  %s323_s7 = scalar_lea.vmem %s2645_s3, %s1466_s25 }
  0x1c PF: > { %v1940_v1 = vld [vmem:[%s305_s28] sm:$0xff]  ;;  %vm352_vm1 = vcmask 64512   ;;  %v336_v6 = vld [vmem:[%s1925_s9 + $0x8] sm:$0xff]  ;;  %v337_v12 = vld [vmem:[%s1925_s9 + $0x10] sm:$0xff]  ;;  %p1325_p12 = scmp.eq.s32.totalorder %s1817_s16, 1  ;;  %p1326_p13 = scmp.eq.s32.totalorder %s1813_s15, 1 }
  0x1d   : > { %v1942_v2 = vld [vmem:[%s323_s7] sm:$0xff]  ;;  %1540 = vmatprep.subr.mxu0 %v1940_v1  ;;  %v801_v7 = vld [vmem:[%s1930_s12 + $0x8] sm:$0xff]  ;;  %v547_v10 = vmul.f32 %v336_v6, %v336_v6  ;;  %v802_v13 = vld [vmem:[%s1930_s12 + $0x10] sm:$0xff]  ;;  %v548_v20 = vmul.f32 %v337_v12, %v337_v12 }
  0x1e   : > { %v335_v3 = vld [vmem:[%s1925_s9] sm:$0xff]  ;;  %1566 = vmatprep.subr.mxu1 %v1942_v2  ;;  %1541 = vmatpush3.msra.mxu0 %v1940_v1  ;;  %v1011_v9 = vmul.f32 %v801_v7, %v801_v7  ;;  %v338_v15 = vld [vmem:[%s1925_s9 + $0x18] sm:$0xff]  ;;  %v1012_v19 = vmul.f32 %v802_v13, %v802_v13  ;;  %v340_v23 = vld [vmem:[%s1925_s9 + $0x28] sm:$0xff]  ;;  %p2610_p0 = pnand %p1326_p13, %p1325_p12 }
  0x1f   : > { %v546_v4 = vmul.f32 %v335_v3, %v335_v3  ;;  %v800_v5 = vld [vmem:[%s1930_s12] sm:$0xff]  ;;  %1542 = vmatprep.mubr.msk.f32.mxu0 %vm352_vm1, %v335_v3  ;;  %1567 = vmatpush3.msra.mxu1 %v1942_v2  ;;  %v803_v16 = vld [vmem:[%s1930_s12 + $0x18] sm:$0xff]  ;;  %v565_v18 = vsel %vm352_vm1, %v547_v10, 0.0  ;;  %v805_v24 = vld [vmem:[%s1930_s12 + $0x28] sm:$0xff]  ;;  %v568_v26 = vsel %vm352_vm1, %v548_v20, 0.0  ;;  %v549_v28 = vmul.f32 %v338_v15, %v338_v15  ;;  %s2654_s6 = scalar_lea.vmem (!%p2610_p0), %s2646_s4, %s2672_s17 }
  0x20   : > { %v1010_v8 = vmul.f32 %v800_v5, %v800_v5  ;;  %1568 = vmatprep.mubr.msk.f32.mxu1 %vm352_vm1, %v800_v5  ;;  %1543 = vmatmul.mubr.msk.f32.vlgmr.msra.gmra.mrb[0].mxu0 %vm352_vm1, %v336_v6  ;;  %v1029_v17 = vsel %vm352_vm1, %v1011_v9, 0.0  ;;  %v339_v21 = vld [vmem:[%s1925_s9 + $0x20] sm:$0xff]  ;;  %v1032_v25 = vsel %vm352_vm1, %v1012_v19, 0.0  ;;  %v1013_v27 = vmul.f32 %v803_v16, %v803_v16  ;;  %v341_v29 = vld [vmem:[%s1925_s9 + $0x30] sm:$0xff]  ;;  %v342_v31 = vld [vmem:[%s1925_s9 + $0x38] sm:$0xff] }
  0x21   : > { %v562_v11 = vsel %vm352_vm1, %v546_v4, 0.0  ;;  %1569 = vmatmul.mubr.msk.f32.vlgmr.msra.gmra.mrb[0].mxu1 %vm352_vm1, %v801_v7  ;;  %1545 = vmatprep.mubr.msk.f32.mxu0 %vm352_vm1, %v337_v12  ;;  %v804_v22 = vld [vmem:[%s1930_s12 + $0x20] sm:$0xff]  ;;  %v806_v30 = vld [vmem:[%s1930_s12 + $0x30] sm:$0xff]  ;;  %v807_v32 = vld [vmem:[%s1930_s12 + $0x38] sm:$0xff]  ;;  %v571_v34 = vsel %vm352_vm1, %v549_v28, 0.0  ;;  %v550_v36 = vmul.f32 %v339_v21, %v339_v21  ;;  %v1015_v43 = vmul.f32 %v805_v24, %v805_v24 }
  0x22   : > { %v1026_v14 = vsel %vm352_vm1, %v1010_v8, 0.0  ;;  %563 = vadd.xlane.f32.xlu0 %v562_v11  ;;  %1571 = vmatprep.mubr.msk.f32.mxu1 %vm352_vm1, %v802_v13  ;;  %v1035_v33 = vsel %vm352_vm1, %v1013_v27, 0.0  ;;  %v1014_v35 = vmul.f32 %v804_v22, %v804_v22  ;;  %v343_v37 = vld [vmem:[%s1925_s9 + $0x40] sm:$0xff]  ;;  %v344_v39 = vld [vmem:[%s1925_s9 + $0x48] sm:$0xff]  ;;  %v551_v44 = vmul.f32 %v340_v23, %v340_v23  ;;  %v345_v45 = vld [vmem:[%s1925_s9 + $0x50] sm:$0xff] }
  0x23   : > { %1027 = vadd.xlane.f32.xlu1 %v1026_v14  ;;  %v808_v38 = vld [vmem:[%s1930_s12 + $0x40] sm:$0xff]  ;;  %v809_v40 = vld [vmem:[%s1930_s12 + $0x48] sm:$0xff]  ;;  %v574_v42 = vsel %vm352_vm1, %v550_v36, 0.0  ;;  %v810_v46 = vld [vmem:[%s1930_s12 + $0x50] sm:$0xff]  ;;  %v1041_v49 = vsel %vm352_vm1, %v1015_v43, 0.0  ;;  %v1016_v51 = vmul.f32 %v806_v30, %v806_v30  ;;  %v552_v52 = vmul.f32 %v341_v29, %v341_v29 }
  0x24   : > { %1546 = vmatmul.mubr.msk.f32.gmra.mrb[2].mxu0 %vm352_vm1, %v338_v15  ;;  %v1038_v41 = vsel %vm352_vm1, %v1014_v35, 0.0  ;;  %v346_v47 = vld [vmem:[%s1925_s9 + $0x58] sm:$0xff]  ;;  %v577_v50 = vsel %vm352_vm1, %v551_v44, 0.0  ;;  %v347_v53 = vld [vmem:[%s1925_s9 + $0x60] sm:$0xff]  ;;  %v348_v55 = vld [vmem:[%s1925_s9 + $0x68] sm:$0xff]  ;;  %v1017_v59 = vmul.f32 %v807_v32, %v807_v32  ;;  %v553_v60 = vmul.f32 %v342_v31, %v342_v31 }
  0x25   : > { %1572 = vmatmul.mubr.msk.f32.gmra.mrb[2].mxu1 %vm352_vm1, %v803_v16  ;;  %1548 = vmatprep.mubr.msk.f32.mxu0 %vm352_vm1, %v339_v21  ;;  %v811_v48 = vld [vmem:[%s1930_s12 + $0x58] sm:$0xff]  ;;  %v812_v54 = vld [vmem:[%s1930_s12 + $0x60] sm:$0xff]  ;;  %v813_v56 = vld [vmem:[%s1930_s12 + $0x68] sm:$0xff]  ;;  %v1044_v57 = vsel %vm352_vm1, %v1016_v51, 0.0  ;;  %v580_v58 = vsel %vm352_vm1, %v552_v52, 0.0  ;;  %v1018_v5 = vmul.f32 %v808_v38, %v808_v38  ;;  %v554_v6 = vmul.f32 %v343_v37, %v343_v37 }
  0x26   : > { %566 = vadd.xlane.f32.xlu0 %v565_v18  ;;  %1574 = vmatprep.mubr.msk.f32.mxu1 %vm352_vm1, %v804_v22  ;;  %v349_v61 = vld [vmem:[%s1925_s9 + $0x70] sm:$0xff]  ;;  %v350_v63 = vld [vmem:[%s1925_s9 + $0x78] sm:$0xff]  ;;  %v1047_v3 = vsel %vm352_vm1, %v1017_v59, 0.0  ;;  %v583_v4 = vsel %vm352_vm1, %v553_v60, 0.0  ;;  %v1019_v9 = vmul.f32 %v809_v40, %v809_v40  ;;  %v555_v10 = vmul.f32 %v344_v39, %v344_v39 }
  0x27   : > { %1030 = vadd.xlane.f32.xlu1 %v1029_v17  ;;  %v814_v62 = vld [vmem:[%s1930_s12 + $0x70] sm:$0xff]  ;;  %v815_v0 = vld [vmem:[%s1930_s12 + $0x78] sm:$0xff]  ;;  %v1050_v7 = vsel %vm352_vm1, %v1018_v5, 0.0  ;;  %v586_v8 = vsel %vm352_vm1, %v554_v6, 0.0  ;;  %v1020_v13 = vmul.f32 %v810_v46, %v810_v46  ;;  %v556_v14 = vmul.f32 %v345_v45, %v345_v45 }
  0x28   : > { %1549 = vmatmul.mubr.msk.f32.gmra.mrb[4].mxu0 %vm352_vm1, %v340_v23  ;;  %v1053_v11 = vsel %vm352_vm1, %v1019_v9, 0.0  ;;  %v589_v12 = vsel %vm352_vm1, %v555_v10, 0.0  ;;  %v1021_v17 = vmul.f32 %v811_v48, %v811_v48  ;;  %v557_v18 = vmul.f32 %v346_v47, %v346_v47 }
  0x29   : > { %1575 = vmatmul.mubr.msk.f32.gmra.mrb[4].mxu1 %vm352_vm1, %v805_v24  ;;  %1551 = vmatprep.mubr.msk.f32.mxu0 %vm352_vm1, %v341_v29  ;;  %v1056_v15 = vsel %vm352_vm1, %v1020_v13, 0.0  ;;  %v592_v16 = vsel %vm352_vm1, %v556_v14, 0.0  ;;  %v1022_v21 = vmul.f32 %v812_v54, %v812_v54  ;;  %v558_v22 = vmul.f32 %v347_v53, %v347_v53 }
  0x2a   : > { %569 = vadd.xlane.f32.xlu0 %v568_v26  ;;  %1577 = vmatprep.mubr.msk.f32.mxu1 %vm352_vm1, %v806_v30  ;;  %v1059_v19 = vsel %vm352_vm1, %v1021_v17, 0.0  ;;  %v595_v20 = vsel %vm352_vm1, %v557_v18, 0.0  ;;  %v559_v26 = vmul.f32 %v348_v55, %v348_v55  ;;  %v1024_v29 = vmul.f32 %v814_v62, %v814_v62 }
  0x2b   : > { %1033 = vadd.xlane.f32.xlu1 %v1032_v25  ;;  %v1062_v23 = vsel %vm352_vm1, %v1022_v21, 0.0  ;;  %v598_v24 = vsel %vm352_vm1, %v558_v22, 0.0  ;;  %v1023_v25 = vmul.f32 %v813_v56, %v813_v56  ;;  %v560_v30 = vmul.f32 %v349_v61, %v349_v61 }
  0x2c   : > { %1552 = vmatmul.mubr.msk.f32.gmra.mrb[6].mxu0 %vm352_vm1, %v342_v31  ;;  %v601_v28 = vsel %vm352_vm1, %v559_v26, 0.0  ;;  %v1068_v31 = vsel %vm352_vm1, %v1024_v29, 0.0 }
  0x2d   : > { %1578 = vmatmul.mubr.msk.f32.gmra.mrb[6].mxu1 %vm352_vm1, %v807_v32  ;;  %1554 = vmatprep.mubr.msk.f32.mxu0 %vm352_vm1, %v343_v37  ;;  %v1065_v27 = vsel %vm352_vm1, %v1023_v25, 0.0  ;;  %v604_v32 = vsel %vm352_vm1, %v560_v30, 0.0  ;;  %v1186_v37 = vmul.f32 %v1942_v2, %v1942_v2 }
  0x2e   : > { %572 = vadd.xlane.f32.xlu0 %v571_v34  ;;  %1580 = vmatprep.mubr.msk.f32.mxu1 %vm352_vm1, %v808_v38  ;;  %v561_v34 = vmul.f32 %v350_v63, %v350_v63  ;;  %v722_v38 = vmul.f32 %v1940_v1, %v1940_v1 }
  0x2f   : > { %1036 = vadd.xlane.f32.xlu1 %v1035_v33  ;;  %v1025_v33 = vmul.f32 %v815_v0, %v815_v0 }
  0x30   : > { %1555 = vmatmul.mubr.msk.f32.gmra.mrb[8].mxu0 %vm352_vm1, %v344_v39  ;;  %v607_v36 = vsel %vm352_vm1, %v561_v34, 0.0  ;;  %v1187_v39 = vrot.slane %v1186_v37, 4 }
  0x31   : > { %1581 = vmatmul.mubr.msk.f32.gmra.mrb[8].mxu1 %vm352_vm1, %v809_v40  ;;  %1557 = vmatprep.mubr.msk.f32.mxu0 %vm352_vm1, %v345_v45  ;;  %v1071_v35 = vsel %vm352_vm1, %v1025_v33, 0.0  ;;  %v723_v40 = vrot.slane %v722_v38, 4 }
  0x32   : > { %575 = vadd.xlane.f32.xlu0 %v574_v42  ;;  %1583 = vmatprep.mubr.msk.f32.mxu1 %vm352_vm1, %v810_v46 }
  0x33   : > { %1039 = vadd.xlane.f32.xlu1 %v1038_v41  ;;  %v1188_v41 = vadd.f32 %v1187_v39, %v1186_v37  ;;  %v724_v42 = vadd.f32 %v723_v40, %v722_v38 }
  0x34   : > { %1558 = vmatmul.mubr.msk.f32.gmra.mrb[10].mxu0 %vm352_vm1, %v346_v47 }
  0x35   : > { %1584 = vmatmul.mubr.msk.f32.gmra.mrb[10].mxu1 %vm352_vm1, %v811_v48  ;;  %1560 = vmatprep.mubr.msk.f32.mxu0 %vm352_vm1, %v347_v53  ;;  %v1189_v43 = vrot.slane %v1188_v41, 2  ;;  %v725_v44 = vrot.slane %v724_v42, 2 }
  0x36   : > { %578 = vadd.xlane.f32.xlu0 %v577_v50  ;;  %1586 = vmatprep.mubr.msk.f32.mxu1 %vm352_vm1, %v812_v54 }
  0x37   : > { %1042 = vadd.xlane.f32.xlu1 %v1041_v49  ;;  %v1190_v45 = vadd.f32 %v1189_v43, %v1188_v41  ;;  %v726_v46 = vadd.f32 %v725_v44, %v724_v42 }
  0x38   : > { %1561 = vmatmul.mubr.msk.f32.gmra.mrb[12].mxu0 %vm352_vm1, %v348_v55 }
  0x39   : > { %1587 = vmatmul.mubr.msk.f32.gmra.mrb[12].mxu1 %vm352_vm1, %v813_v56  ;;  %1563 = vmatprep.mubr.msk.f32.mxu0 %vm352_vm1, %v349_v61  ;;  %v1191_v47 = vrot.slane %v1190_v45, 1  ;;  %v727_v48 = vrot.slane %v726_v46, 1 }
  0x3a   : > { %581 = vadd.xlane.f32.xlu0 %v580_v58  ;;  %1589 = vmatprep.mubr.msk.f32.mxu1 %vm352_vm1, %v814_v62 }
  0x3b   : > { %1045 = vadd.xlane.f32.xlu1 %v1044_v57  ;;  %v1192_v49 = vadd.f32 %v1191_v47, %v1190_v45  ;;  %v728_v50 = vadd.f32 %v727_v48, %v726_v46 }
  0x3c   : > { %1564 = vmatmul.mubr.msk.f32.gmra.mrb[14].mxu0 %vm352_vm1, %v350_v63 }
  0x3d   : > { %1590 = vmatmul.mubr.msk.f32.gmra.mrb[14].mxu1 %vm352_vm1, %v815_v0  ;;  %1651 = vrsqrt.f32 %v1192_v49  ;;  %vm1195_vm2 = vcmp.eq.f32.partialorder %v1192_v49, inf  ;;  %vm731_vm3 = vcmp.eq.f32.partialorder %v728_v50, inf  ;;  %v1198_v63 = vand.u32 2147483648, %v1192_v49 }
  0x3e   : > { %584 = vadd.xlane.f32.xlu0 %v583_v4  ;;  %1653 = vrsqrt.f32 %v728_v50  ;;  %v734_v0 = vand.u32 2147483648, %v728_v50  ;;  %vm1197_vm4 = vcmp.eq.f32.partialorder %v1192_v49, 0.0  ;;  %vm733_vm5 = vcmp.eq.f32.partialorder %v728_v50, 0.0 }
  0x3f   : > { %1048 = vadd.xlane.f32.xlu1 %v1047_v3 }
  0x42   : > { %587 = vadd.xlane.f32.xlu0 %v586_v8 }
  0x43   : > { %1051 = vadd.xlane.f32.xlu1 %v1050_v7 }
  0x46   : > { %590 = vadd.xlane.f32.xlu0 %v589_v12 }
  0x47   : > { %1054 = vadd.xlane.f32.xlu1 %v1053_v11  ;;  %v1652_v53 = vpop.eup %1651 }
  0x48   : > { %v1654_v56 = vpop.eup %1653  ;;  %v1194_v57 = vmul.f32 %v1652_v53, %v1192_v49 }
  0x49   : > { %v730_v60 = vmul.f32 %v1654_v56, %v728_v50 }
  0x4a   : > { %593 = vadd.xlane.f32.xlu0 %v592_v16  ;;  %v1196_v62 = vsel %vm1195_vm2, %v1192_v49, %v1194_v57 }
  0x4b   : > { %1057 = vadd.xlane.f32.xlu1 %v1056_v15  ;;  %v732_v6 = vsel %vm731_vm3, %v728_v50, %v730_v60  ;;  %v2079_v11 = vsel %vm1197_vm4, %v1198_v63, %v1196_v62 }
  0x4c   : > { %v2081_v12 = vsel %vm733_vm5, %v734_v0, %v732_v6 }
  0x4e   : > { %596 = vadd.xlane.f32.xlu0 %v595_v20 }
  0x4f   : > { %1060 = vadd.xlane.f32.xlu1 %v1059_v19 }
  0x52   : > { %599 = vadd.xlane.f32.xlu0 %v598_v24 }
  0x53   : > { %1063 = vadd.xlane.f32.xlu1 %v1062_v23 }
  0x56   : > { %602 = vadd.xlane.f32.xlu0 %v601_v28 }
  0x57   : > { %1066 = vadd.xlane.f32.xlu1 %v1065_v27 }
  0x5a   : > { %605 = vadd.xlane.f32.xlu0 %v604_v32 }
  0x5b   : > { %1069 = vadd.xlane.f32.xlu1 %v1068_v31 }
  0x5e   : > { %608 = vadd.xlane.f32.xlu0 %v607_v36 }
  0x5f   : > { %1072 = vadd.xlane.f32.xlu1 %v1071_v35 }
  0xaf   : > { %v2050_v2 = vpop.xlane.xlu0 %563 }
  0xb0   : > { %v2048_v51 = vpop.xlane.xlu1 %1027  ;;  %vm612_vm8 = vcmp.eq.f32.partialorder %v2050_v2, inf  ;;  %vm614_vm9 = vcmp.eq.f32.partialorder %v2050_v2, 0.0  ;;  %v615_v17 = vand.u32 2147483648, %v2050_v2 }
  0xb1   : > { %vm1076_vm6 = vcmp.eq.f32.partialorder %v2048_v51, inf  ;;  %vm1078_vm7 = vcmp.eq.f32.partialorder %v2048_v51, 0.0  ;;  %v1079_v13 = vand.u32 2147483648, %v2048_v51 }
  0xb3   : > { %v2054_v1 = vpop.xlane.xlu0 %566 }
  0xb4   : > { %v2052_v52 = vpop.xlane.xlu1 %1030  ;;  %vm619_vm12 = vcmp.eq.f32.partialorder %v2054_v1, inf  ;;  %vm621_vm13 = vcmp.eq.f32.partialorder %v2054_v1, 0.0  ;;  %v622_v23 = vand.u32 2147483648, %v2054_v1 }
  0xb5   : > { %1655 = vrsqrt.f32 %v2052_v52  ;;  %vm1083_vm10 = vcmp.eq.f32.partialorder %v2052_v52, inf  ;;  %vm1085_vm11 = vcmp.eq.f32.partialorder %v2052_v52, 0.0  ;;  %v1086_v20 = vand.u32 2147483648, %v2052_v52 }
  0xb6   : > { %1657 = vrsqrt.f32 %v2048_v51 }
  0xb7   : > { %1659 = vrsqrt.f32 %v2050_v2  ;;  %v2062_v55 = vpop.xlane.xlu0 %569 }
  0xb8   : > { %1661 = vrsqrt.f32 %v2054_v1  ;;  %v2060_v54 = vpop.xlane.xlu1 %1033  ;;  %vm626_vm15 = vcmp.eq.f32.partialorder %v2062_v55, inf  ;;  %v629_v32 = vand.u32 2147483648, %v2062_v55  ;;  %vm628_vm5 = vcmp.eq.f32.partialorder %v2062_v55, 0.0 }
  0xb9   : > { %vm1090_vm14 = vcmp.eq.f32.partialorder %v2060_v54, inf  ;;  %v1093_v24 = vand.u32 2147483648, %v2060_v54 }
  0xbb   : > { %v2066_v59 = vpop.xlane.xlu0 %572 }
  0xbc   : > { %v2064_v58 = vpop.xlane.xlu1 %1036  ;;  %1663 = vrsqrt.f32 %v2066_v59  ;;  %vm633_vm2 = vcmp.eq.f32.partialorder %v2066_v59, inf  ;;  %vm635_vm3 = vcmp.eq.f32.partialorder %v2066_v59, 0.0  ;;  %v636_v44 = vand.u32 2147483648, %v2066_v59 }
  0xbd   : > { %1665 = vrsqrt.f32 %v2060_v54  ;;  %vm1097_vm0 = vcmp.eq.f32.partialorder %v2064_v58, inf  ;;  %vm1099_vm1 = vcmp.eq.f32.partialorder %v2064_v58, 0.0  ;;  %v1100_v36 = vand.u32 2147483648, %v2064_v58 }
  0xbe   : > { %1667 = vrsqrt.f32 %v2064_v58 }
  0xbf   : > { %v1656_v61 = vpop.eup %1655  ;;  %v2073_v5 = vpop.xlane.xlu0 %575  ;;  %1669 = vrsqrt.f32 %v2062_v55 }
  0xc0   : > { %v1658_v3 = vpop.eup %1657  ;;  %v2071_v4 = vpop.xlane.xlu1 %1039  ;;  %v1082_v9 = vmul.f32 %v1656_v61, %v2052_v52 }
  0xc1   : > { %v1660_v7 = vpop.eup %1659  ;;  %v1075_v10 = vmul.f32 %v1658_v3, %v2048_v51  ;;  %1671 = vrsqrt.f32 %v2071_v4  ;;  %vm1104_vm4 = vcmp.eq.f32.partialorder %v2071_v4, inf  ;;  %v1107_v48 = vand.u32 2147483648, %v2071_v4 }
  0xc2   : > { %v1662_v8 = vpop.eup %1661  ;;  %v611_v16 = vmul.f32 %v1660_v7, %v2050_v2  ;;  %v1084_v19 = vsel %vm1083_vm10, %v2052_v52, %v1082_v9  ;;  %1673 = vrsqrt.f32 %v2073_v5 }
  0xc3   : > { %v2089_v15 = vpop.xlane.xlu0 %578  ;;  %v618_v18 = vmul.f32 %v1662_v8, %v2054_v1  ;;  %v1077_v21 = vsel %vm1076_vm6, %v2048_v51, %v1075_v10  ;;  %v1087_v30 = vsel %vm1085_vm11, %v1086_v20, %v1084_v19  ;;  %vm640_vm6 = vcmp.eq.f32.partialorder %v2073_v5, inf }
  0xc4   : > { %v2087_v14 = vpop.xlane.xlu1 %1042  ;;  %v613_v28 = vsel %vm612_vm8, %v2050_v2, %v611_v16  ;;  %v1080_v34 = vsel %vm1078_vm7, %v1079_v13, %v1077_v21  ;;  %v1201_v40 = vmul.f32 %v2079_v11, %v1087_v30  ;;  %v643_v2 = vand.u32 2147483648, %v2073_v5 }
  0xc5   : > { %1675 = vrsqrt.f32 %v2087_v14  ;;  %v620_v29 = vsel %vm619_vm12, %v2054_v1, %v618_v18  ;;  %v616_v41 = vsel %vm614_vm9, %v615_v17, %v613_v28  ;;  %v1200_v45 = vmul.f32 %v2079_v11, %v1080_v34 }
  0xc6   : > { %v1664_v22 = vpop.eup %1663  ;;  %1677 = vrsqrt.f32 %v2089_v15  ;;  %v623_v39 = vsel %vm621_vm13, %v622_v23, %v620_v29  ;;  %v736_v50 = vmul.f32 %v2081_v12, %v616_v41  ;;  %v1217_v53 = vadd.f32 1e-06, %v1201_v40 }
  0xc7   : > { %v2111_v26 = vpop.xlane.xlu0 %581  ;;  %v1666_v27 = vpop.eup %1665  ;;  %v632_v33 = vmul.f32 %v1664_v22, %v2066_v59  ;;  %v737_v49 = vmul.f32 %v2081_v12, %v623_v39  ;;  %vm1111_vm7 = vcmp.eq.f32.partialorder %v2087_v14, inf  ;;  %v1114_v0 = vand.u32 2147483648, %v2087_v14 }
  0xc8   : > { %v2109_v25 = vpop.xlane.xlu1 %1045  ;;  %v1668_v31 = vpop.eup %1667  ;;  %v1089_v42 = vmul.f32 %v1666_v27, %v2060_v54  ;;  %vm647_vm8 = vcmp.eq.f32.partialorder %v2089_v15, inf  ;;  %v650_v3 = vand.u32 2147483648, %v2089_v15  ;;  %vm1092_vm9 = vcmp.eq.f32.partialorder %v2060_v54, 0.0 }
  0xc9   : > { %v1670_v35 = vpop.eup %1669  ;;  %1679 = vrsqrt.f32 %v2109_v25  ;;  %v1096_v43 = vmul.f32 %v1668_v31, %v2064_v58  ;;  %v634_v47 = vsel %vm633_vm2, %v2066_v59, %v632_v33  ;;  %v753_v59 = vadd.f32 1e-06, %v737_v49 }
  0xca   : > { %v625_v46 = vmul.f32 %v1670_v35, %v2062_v55  ;;  %1681 = vrsqrt.f32 %v2111_v26  ;;  %v2163_v57 = vsel %vm1090_vm14, %v2060_v54, %v1089_v42  ;;  %v637_v61 = vsel %vm635_vm3, %v636_v44, %v634_v47 }
  0xcb   : > { %v2133_v38 = vpop.xlane.xlu0 %584  ;;  %v1672_v51 = vpop.eup %1671  ;;  %v1098_v60 = vsel %vm1097_vm0, %v2064_v58, %v1096_v43  ;;  %v752_v8 = vadd.f32 1e-06, %v736_v50  ;;  %vm649_vm10 = vcmp.eq.f32.partialorder %v2089_v15, 0.0  ;;  %v739_v16 = vmul.f32 %v2081_v12, %v637_v61 }
  0xcc   : > { %v2131_v37 = vpop.xlane.xlu1 %1048  ;;  %v1674_v56 = vpop.eup %1673  ;;  %v627_v63 = vsel %vm626_vm15, %v2062_v55, %v625_v46  ;;  %v1103_v7 = vmul.f32 %v1672_v51, %v2071_v4  ;;  %v1101_v17 = vsel %vm1099_vm1, %v1100_v36, %v1098_v60  ;;  %vm1118_vm11 = vcmp.eq.f32.partialorder %v2109_v25, inf }
  0xcd   : > { %1683 = vrsqrt.f32 %v2131_v37  ;;  %v639_v9 = vmul.f32 %v1674_v56, %v2073_v5  ;;  %v1121_v19 = vand.u32 2147483648, %v2109_v25  ;;  %v1216_v20 = vadd.f32 1e-06, %v1200_v45 }
  0xce   : > { %1685 = vrsqrt.f32 %v2133_v38  ;;  %vm654_vm12 = vcmp.eq.f32.partialorder %v2111_v26, inf  ;;  %v657_v23 = vand.u32 2147483648, %v2111_v26  ;;  %v2201_v58 = vsel %vm1104_vm4, %v2071_v4, %v1103_v7 }
  0xcf   : > { %v2158_v1 = vpop.xlane.xlu0 %587  ;;  %v1676_v62 = vpop.eup %1675  ;;  %vm1113_vm13 = vcmp.eq.f32.partialorder %v2087_v14, 0.0  ;;  %v1128_v27 = vand.u32 2147483648, %v2131_v37  ;;  %v1203_v28 = vmul.f32 %v2079_v11, %v1101_v17  ;;  %v2209_v30 = vsel %vm640_vm6, %v2073_v5, %v639_v9 }
  0xd0   : > { %v2156_v52 = vpop.xlane.xlu1 %1051  ;;  %v1678_v6 = vpop.eup %1677  ;;  %v1110_v21 = vmul.f32 %v1676_v62, %v2087_v14  ;;  %vm1125_vm14 = vcmp.eq.f32.partialorder %v2131_v37, inf  ;;  %vm661_vm15 = vcmp.eq.f32.partialorder %v2133_v38, inf  ;;  %v755_v35 = vadd.f32 1e-06, %v739_v16 }
  0xd1   : > { %1687 = vrsqrt.f32 %v2156_v52  ;;  %v646_v22 = vmul.f32 %v1678_v6, %v2089_v15  ;;  %v664_v39 = vand.u32 2147483648, %v2133_v38  ;;  %vm1132_vm0 = vcmp.eq.f32.partialorder %v2156_v52, inf }
  0xd2   : > { %1689 = vrsqrt.f32 %v2158_v1  ;;  %v630_v40 = vsel %vm628_vm5, %v629_v32, %v627_v63  ;;  %v1112_v42 = vsel %vm1111_vm7, %v2087_v14, %v1110_v21  ;;  %v1135_v44 = vand.u32 2147483648, %v2156_v52 }
  0xd3   : > { %v2185_v13 = vpop.xlane.xlu0 %590  ;;  %1691 = vrcp.f32 %v1217_v53  ;;  %v1680_v18 = vpop.eup %1679  ;;  %v648_v43 = vsel %vm647_vm8, %v2089_v15, %v646_v22  ;;  %vm668_vm1 = vcmp.eq.f32.partialorder %v2158_v1, inf  ;;  %v671_v55 = vand.u32 2147483648, %v2158_v1 }
  0xd4   : > { %v2183_v10 = vpop.xlane.xlu1 %1054  ;;  %v1682_v29 = vpop.eup %1681  ;;  %v1117_v31 = vmul.f32 %v1680_v18, %v2109_v25  ;;  %v1219_v32 = vadd.f32 1e-06, %v1203_v28  ;;  %vm642_vm2 = vcmp.eq.f32.partialorder %v2073_v5, 0.0  ;;  %v738_v51 = vmul.f32 %v2081_v12, %v630_v40 }
  0xd5   : > { %1693 = vrsqrt.f32 %v2183_v10  ;;  %v653_v46 = vmul.f32 %v1682_v29, %v2111_v26  ;;  %v1094_v53 = vsel %vm1092_vm9, %v1093_v24, %v2163_v57  ;;  %vm1139_vm3 = vcmp.eq.f32.partialorder %v2183_v10, inf }
  0xd6   : > { %1695 = vrsqrt.f32 %v2185_v13  ;;  %v2240_v47 = vsel %vm1118_vm11, %v2109_v25, %v1117_v31  ;;  %v651_v62 = vsel %vm649_vm10, %v650_v3, %v648_v43  ;;  %v1142_v54 = vand.u32 2147483648, %v2183_v10 }
  0xd7   : > { %1697 = vrcp.f32 %v753_v59  ;;  %v2216_v34 = vpop.xlane.xlu0 %593  ;;  %v1684_v36 = vpop.eup %1683  ;;  %vm675_vm4 = vcmp.eq.f32.partialorder %v2185_v13, inf  ;;  %v2269_v57 = vsel %vm654_vm12, %v2111_v26, %v653_v46  ;;  %v678_v7 = vand.u32 2147483648, %v2185_v13 }
  0xd8   : > { %v2214_v33 = vpop.xlane.xlu1 %1057  ;;  %1699 = vrcp.f32 %v752_v8  ;;  %v1686_v41 = vpop.eup %1685  ;;  %v1124_v60 = vmul.f32 %v1684_v36, %v2131_v37  ;;  %v1202_v15 = vmul.f32 %v2079_v11, %v1094_v53  ;;  %vm1106_vm5 = vcmp.eq.f32.partialorder %v2071_v4, 0.0 }
  0xd9   : > { %1701 = vrsqrt.f32 %v2214_v33  ;;  %v660_v61 = vmul.f32 %v1686_v41, %v2133_v38  ;;  %vm1146_vm6 = vcmp.eq.f32.partialorder %v2214_v33, inf  ;;  %v754_v16 = vadd.f32 1e-06, %v738_v51 }
  0xda   : > { %1703 = vrsqrt.f32 %v2216_v34  ;;  %v741_v17 = vmul.f32 %v2081_v12, %v651_v62  ;;  %v1115_v18 = vsel %vm1113_vm13, %v1114_v0, %v1112_v42  ;;  %v2290_v21 = vsel %vm1125_vm14, %v2131_v37, %v1124_v60 }
  0xdb   : > { %v1688_v45 = vpop.eup %1687  ;;  %1705 = vrcp.f32 %v1216_v20  ;;  %v2244_v50 = vpop.xlane.xlu0 %596  ;;  %v2295_v22 = vsel %vm661_vm15, %v2133_v38, %v660_v61  ;;  %v1149_v28 = vand.u32 2147483648, %v2214_v33  ;;  %vm682_vm7 = vcmp.eq.f32.partialorder %v2216_v34, inf }
  0xdc   : > { %v2242_v49 = vpop.xlane.xlu1 %1060  ;;  %1707 = vrcp.f32 %v755_v35  ;;  %v1690_v56 = vpop.eup %1689  ;;  %v1131_v6 = vmul.f32 %v1688_v45, %v2156_v52  ;;  %v685_v31 = vand.u32 2147483648, %v2216_v34  ;;  %v1218_v41 = vadd.f32 1e-06, %v1202_v15 }
  0xdd   : > { %1709 = vrsqrt.f32 %v2242_v49  ;;  %v2260_v63 = vpop.eup %1691  ;;  %v667_v59 = vmul.f32 %v1690_v56, %v2158_v1  ;;  %vm1153_vm8 = vcmp.eq.f32.partialorder %v2242_v49, inf  ;;  %v1156_v40 = vand.u32 2147483648, %v2242_v49 }
  0xde   : > { %1711 = vrsqrt.f32 %v2244_v50  ;;  %v2304_v14 = vsel %vm1132_vm0, %v2156_v52, %v1131_v6  ;;  %v1205_v42 = vmul.f32 %v2079_v11, %v1115_v18  ;;  %vm1127_vm9 = vcmp.eq.f32.partialorder %v2131_v37, 0.0 }
  0xdf   : > { %v1694_v24 = vpop.eup %1693  ;;  %1713 = vrcp.f32 %v1219_v32  ;;  %v2278_v9 = vpop.xlane.xlu0 %599  ;;  %vm663_vm10 = vcmp.eq.f32.partialorder %v2133_v38, 0.0  ;;  %v2319_v45 = vsel %vm668_vm1, %v2158_v1, %v667_v59  ;;  %v692_v46 = vand.u32 2147483648, %v2244_v50 }
  0xe0   : > { %v1696_v3 = vpop.eup %1695  ;;  %v2276_v8 = vpop.xlane.xlu1 %1063  ;;  %v1138_v0 = vmul.f32 %v1694_v24, %v2183_v10  ;;  %v757_v53 = vadd.f32 1e-06, %v741_v17  ;;  %vm689_vm11 = vcmp.eq.f32.partialorder %v2244_v50, inf  ;;  %v644_v61 = vsel %vm642_vm2, %v643_v2, %v2209_v30 }
  0xe1   : > { %v2285_v20 = vpop.eup %1697  ;;  %1715 = vrsqrt.f32 %v2276_v8  ;;  %v674_v36 = vmul.f32 %v1696_v3, %v2185_v13  ;;  %vm1160_vm12 = vcmp.eq.f32.partialorder %v2276_v8, inf  ;;  %vm696_vm13 = vcmp.eq.f32.partialorder %v2278_v9, inf }
  0xe2   : > { %v2299_v29 = vpop.eup %1699  ;;  %1717 = vrsqrt.f32 %v2278_v9  ;;  %v2342_v6 = vsel %vm1139_vm3, %v2183_v10, %v1138_v0  ;;  %v1221_v2 = vadd.f32 1e-06, %v1205_v42  ;;  %vm1120_vm14 = vcmp.eq.f32.partialorder %v2109_v25, 0.0 }
  0xe3   : > { %v1702_v35 = vpop.eup %1701  ;;  %v2324_v51 = vpop.xlane.xlu0 %602  ;;  %1719 = vrcp.f32 %v754_v16  ;;  %v2350_v3 = vsel %vm675_vm4, %v2185_v13, %v674_v36  ;;  %vm656_vm15 = vcmp.eq.f32.partialorder %v2111_v26, 0.0  ;;  %vm677_vm0 = vcmp.eq.f32.partialorder %v2185_v13, 0.0 }
  0xe4   : > { %v1704_v43 = vpop.eup %1703  ;;  %v2322_v32 = vpop.xlane.xlu1 %1066  ;;  %v1145_v60 = vmul.f32 %v1702_v35, %v2214_v33  ;;  %v740_v0 = vmul.f32 %v2081_v12, %v644_v61  ;;  %vm703_vm2 = vcmp.eq.f32.partialorder %v2324_v51, inf  ;;  %vm670_vm3 = vcmp.eq.f32.partialorder %v2158_v1, 0.0 }
  0xe5   : > { %v2326_v56 = vpop.eup %1705  ;;  %1721 = vrsqrt.f32 %v2322_v32  ;;  %v681_v5 = vmul.f32 %v1704_v43, %v2216_v34  ;;  %vm1167_vm1 = vcmp.eq.f32.partialorder %v2322_v32, inf  ;;  %vm1141_vm4 = vcmp.eq.f32.partialorder %v2183_v10, 0.0 }
  0xe6   : > { %v2337_v62 = vpop.eup %1707  ;;  %1723 = vrsqrt.f32 %v2324_v51  ;;  %v2368_v36 = vsel %vm1146_vm6, %v2214_v33, %v1145_v60 }
  0xe7   : > { %v1710_v15 = vpop.eup %1709  ;;  %1725 = vrcp.f32 %v1218_v41  ;;  %v2360_v18 = vpop.xlane.xlu0 %605  ;;  %v1108_v41 = vsel %vm1106_vm5, %v1107_v48, %v2201_v58  ;;  %v2386_v60 = vsel %vm682_vm7, %v2216_v34, %v681_v5  ;;  %v756_v48 = vadd.f32 1e-06, %v740_v0 }
  0xe8   : > { %v1712_v30 = vpop.eup %1711  ;;  %v1152_v59 = vmul.f32 %v1710_v15, %v2242_v49  ;;  %v2358_v17 = vpop.xlane.xlu1 %1069  ;;  %1727 = vrcp.f32 %v757_v53  ;;  %v1204_v5 = vmul.f32 %v2079_v11, %v1108_v41  ;;  %vm710_vm6 = vcmp.eq.f32.partialorder %v2360_v18, inf }
  0xe9   : > { %v2363_v35 = vpop.eup %1713  ;;  %1729 = vrsqrt.f32 %v2358_v17  ;;  %v688_v42 = vmul.f32 %v1712_v30, %v2244_v50  ;;  %vm1174_vm5 = vcmp.eq.f32.partialorder %v2358_v17, inf }
  0xea   : > { %1731 = vrsqrt.f32 %v2360_v18  ;;  %v2392_v61 = vsel %vm1153_vm8, %v2242_v49, %v1152_v59  ;;  %v1129_v59 = vsel %vm1127_vm9, %v1128_v27, %v2290_v21 }
  0xeb   : > { %v1716_v53 = vpop.eup %1715  ;;  %1733 = vrcp.f32 %v1221_v2  ;;  %v2398_v16 = vpop.xlane.xlu0 %608  ;;  %v665_v2 = vsel %vm663_vm10, %v664_v39, %v2295_v22  ;;  %v2419_v41 = vsel %vm689_vm11, %v2244_v50, %v688_v42  ;;  %v1207_v30 = vmul.f32 %v2079_v11, %v1129_v59 }
  0xec   : > { %v1718_v58 = vpop.eup %1717  ;;  %v1159_v15 = vmul.f32 %v1716_v53, %v2276_v8  ;;  %v2396_v24 = vpop.xlane.xlu1 %1072  ;;  %v720_v21 = vand.u32 2147483648, %v2398_v16  ;;  %vm717_vm9 = vcmp.eq.f32.partialorder %v2398_v16, inf  ;;  %vm1134_vm10 = vcmp.eq.f32.partialorder %v2156_v52, 0.0 }
  0xed   : > { %v695_v43 = vmul.f32 %v1718_v58, %v2278_v9  ;;  %1735 = vrsqrt.f32 %v2396_v24  ;;  %v2414_v0 = vpop.eup %1719  ;;  %v1184_v39 = vand.u32 2147483648, %v2396_v24  ;;  %v1220_v58 = vadd.f32 1e-06, %v1204_v5 }
  0xee   : > { %v2424_v53 = vsel %vm1160_vm12, %v2276_v8, %v1159_v15  ;;  %1737 = vrsqrt.f32 %v2398_v16  ;;  %v743_v15 = vmul.f32 %v2081_v12, %v665_v2  ;;  %vm1181_vm7 = vcmp.eq.f32.partialorder %v2396_v24, inf }
  0xef   : > { %v1722_v37 = vpop.eup %1721  ;;  %v2432_v27 = vsel %vm696_vm13, %v2278_v9, %v695_v43  ;;  %1739 = vrcp.f32 %v756_v48  ;;  %v658_v43 = vsel %vm656_vm15, %v657_v23, %v2269_v57  ;;  %v1122_v48 = vsel %vm1120_vm14, %v1121_v19, %v2240_v47 }
  0xf0   : > { %v1724_v22 = vpop.eup %1723  ;;  %v1166_v42 = vmul.f32 %v1722_v37, %v2322_v32  ;;  %v679_v5 = vsel %vm677_vm0, %v678_v7, %v2350_v3  ;;  %vm1183_vm8 = vcmp.eq.f32.partialorder %v2396_v24, 0.0  ;;  %1741 = vrcp.f32 %v1220_v58 }
  0xf1   : > { %v2439_v38 = vpop.eup %1725  ;;  %v702_v4 = vmul.f32 %v1724_v22, %v2324_v51  ;;  %v759_v25 = vadd.f32 1e-06, %v743_v15  ;;  %v1223_v26 = vadd.f32 1e-06, %v1207_v30  ;;  %v742_v23 = vmul.f32 %v2081_v12, %v658_v43 }
  0xf2   : > { %v2458_v2 = vpop.eup %1727  ;;  %v2463_v59 = vsel %vm1167_vm1, %v2322_v32, %v1166_v42  ;;  %v1206_v47 = vmul.f32 %v2079_v11, %v1122_v48  ;;  %v745_v57 = vmul.f32 %v2081_v12, %v679_v5  ;;  %vm691_vm11 = vcmp.eq.f32.partialorder %v2244_v50, 0.0 }
  0xf3   : > { %v1730_v19 = vpop.eup %1729  ;;  %v2470_v13 = vsel %vm703_vm2, %v2324_v51, %v702_v4  ;;  %1743 = vrcp.f32 %v759_v25  ;;  %v1143_v4 = vsel %vm1141_vm4, %v1142_v54, %v2342_v6  ;;  %v672_v30 = vsel %vm670_vm3, %v671_v55, %v2319_v45  ;;  %v1544_v42 = vpop.f32.mrb[0].mxu0 }
  0xf4   : > { %v1732_v7 = vpop.eup %1731  ;;  %v1173_v3 = vmul.f32 %v1730_v19, %v2358_v17  ;;  %v1570_v58 = vpop.f32.mrb[0].mxu1  ;;  %1745 = vrcp.f32 %v1223_v26  ;;  %v758_v15 = vadd.f32 1e-06, %v742_v23  ;;  %v1222_v43 = vadd.f32 1e-06, %v1206_v47 }
  0xf5   : > { %v1734_v37 = vpop.eup %1733  ;;  %v709_v22 = vmul.f32 %v1732_v7, %v2360_v18  ;;  %v771_v10 = vmul.f32 %v2285_v20, %v1544_v42  ;;  %v1235_v54 = vmul.f32 %v2260_v63, %v1570_v58  ;;  %v467_v6 = vpop.f32.mrb[1].mxu0  ;;  %v761_v55 = vadd.f32 1e-06, %v745_v57 }
  0xf6   : > { %v2492_v48 = vsel %vm1174_vm5, %v2358_v17, %v1173_v3  ;;  %v931_v1 = vpop.f32.mrb[1].mxu1  ;;  %v769_v25 = vmul.f32 %v2299_v29, %v467_v6  ;;  %1747 = vrcp.f32 %v758_v15  ;;  %vm684_vm12 = vcmp.eq.f32.partialorder %v2216_v34, 0.0 }
  0xf7   : > { %v1736_v45 = vpop.eup %1735  ;;  %v2499_v5 = vsel %vm710_vm6, %v2360_v18, %v709_v22  ;;  %v1233_v26 = vmul.f32 %v2326_v56, %v931_v1  ;;  %vm1155_vm13 = vcmp.eq.f32.partialorder %v2242_v49, 0.0  ;;  %v1265_v20 = vsub.f32 %v771_v10, %v1235_v54  ;;  %v1547_v3 = vpop.f32.mrb[2].mxu0 }
  0xf8   : > { %v1738_v19 = vpop.eup %1737  ;;  %v1180_v63 = vmul.f32 %v1736_v45, %v2396_v24  ;;  %1749 = vrcp.f32 %v1222_v43  ;;  %v1209_v23 = vmul.f32 %v2079_v11, %v1143_v4  ;;  %v1573_v29 = vpop.f32.mrb[2].mxu1  ;;  %v744_v56 = vmul.f32 %v2081_v12, %v672_v30 }
  0xf9   : > { %v1740_v47 = vpop.eup %1739  ;;  %v716_v57 = vmul.f32 %v1738_v19, %v2398_v16  ;;  %v1264_v7 = vsub.f32 %v769_v25, %v1233_v26  ;;  %1751 = vrcp.f32 %v761_v55  ;;  %v1282_v42 = vmul.f32 %v1265_v20, %v1265_v20  ;;  %v477_v43 = vpop.f32.mrb[3].mxu0 }
  0xfa   : > { %v1182_v22 = vsel %vm1181_vm7, %v2396_v24, %v1180_v63  ;;  %v775_v58 = vmul.f32 %v2337_v62, %v1547_v3  ;;  %v1239_v15 = vmul.f32 %v2363_v35, %v1573_v29  ;;  %v941_v4 = vpop.f32.mrb[3].mxu1  ;;  %v773_v6 = vmul.f32 %v2414_v0, %v477_v43  ;;  %v1742_v1 = vpop.eup %1741 }
  0xfb   : > { %v1185_v10 = vsel %vm1183_vm8, %v1184_v39, %v1182_v22  ;;  %v2521_v30 = vsel %vm717_vm9, %v2398_v16, %v716_v57  ;;  %v1281_v54 = vmul.f32 %v1264_v7, %v1264_v7  ;;  %vm1148_vm14 = vcmp.eq.f32.partialorder %v2214_v33, 0.0  ;;  %v1550_v45 = vpop.f32.mrb[4].mxu0 }
  0xfc   : > { %vm705_vm15 = vcmp.eq.f32.partialorder %v2324_v51, 0.0  ;;  %v2527_v62 = vmul.f32 %v2079_v11, %v1185_v10  ;;  %v1267_v35 = vsub.f32 %v775_v58, %v1239_v15  ;;  %v1237_v24 = vmul.f32 %v2439_v38, %v941_v4  ;;  %v1576_v25 = vpop.f32.mrb[4].mxu1  ;;  %v487_v7 = vpop.f32.mrb[5].mxu0 }
  0xfd   : > { %v1225_v39 = vadd.f32 1e-06, %v1209_v23  ;;  %v1297_v55 = vadd.f32 %v1282_v42, %v1281_v54  ;;  %v760_v26 = vadd.f32 1e-06, %v744_v56  ;;  %v1136_v0 = vsel %vm1134_vm10, %v1135_v44, %v2304_v14  ;;  %v1744_v63 = vpop.eup %1743  ;;  %v951_v3 = vpop.f32.mrb[5].mxu1 }
  0xfe   : > { %v693_v19 = vsel %vm691_vm11, %v692_v46, %v2419_v41  ;;  %v1284_v20 = vmul.f32 %v1267_v35, %v1267_v35  ;;  %v1266_v38 = vsub.f32 %v773_v6, %v1237_v24  ;;  %v779_v23 = vmul.f32 %v2458_v2, %v1550_v45  ;;  %v1746_v29 = vpop.eup %1745 }
  0xff   : > { %v1243_v57 = vmul.f32 %v1734_v37, %v1576_v25  ;;  %vm698_vm0 = vcmp.eq.f32.partialorder %v2278_v9, 0.0  ;;  %vm1169_vm1 = vcmp.eq.f32.partialorder %v2322_v32, 0.0  ;;  %v777_v52 = vmul.f32 %v1740_v47, %v487_v7  ;;  %v1553_v37 = vpop.f32.mrb[6].mxu0 }
 0x100   : > { %v1241_v44 = vmul.f32 %v1742_v1, %v951_v3  ;;  %1753 = vrcp.f32 %v1225_v39  ;;  %v1208_v14 = vmul.f32 %v2079_v11, %v1136_v0  ;;  %v1283_v50 = vmul.f32 %v1266_v38, %v1266_v38  ;;  %v1748_v56 = vpop.eup %1747  ;;  %v1579_v22 = vpop.f32.mrb[6].mxu1 }
 0x101   : > { %v1269_v46 = vsub.f32 %v779_v23, %v1243_v57  ;;  %1755 = vrcp.f32 %v760_v26  ;;  %v747_v41 = vmul.f32 %v2081_v12, %v693_v19  ;;  %v1157_v47 = vsel %vm1155_vm13, %v1156_v40, %v2392_v61  ;;  %v497_v6 = vpop.f32.mrb[7].mxu0  ;;  %v961_v1 = vpop.f32.mrb[7].mxu1 }
 0x102   : > { %v1268_v2 = vsub.f32 %v777_v52, %v1241_v44  ;;  %v1224_v42 = vadd.f32 1e-06, %v1208_v14  ;;  %v686_v58 = vsel %vm684_vm12, %v685_v31, %v2386_v60  ;;  %v1750_v15 = vpop.eup %1749  ;;  %v1298_v43 = vadd.f32 %v1297_v55, %v1283_v50 }
 0x103   : > { %v1286_v4 = vmul.f32 %v1269_v46, %v1269_v46  ;;  %v783_v10 = vmul.f32 %v1744_v63, %v1553_v37  ;;  %v1247_v54 = vmul.f32 %v1746_v29, %v1579_v22  ;;  %v1752_v35 = vpop.eup %1751  ;;  %vm1162_vm2 = vcmp.eq.f32.partialorder %v2276_v8, 0.0  ;;  %v1556_v55 = vpop.f32.mrb[8].mxu0 }
 0x104   : > { %v1285_v24 = vmul.f32 %v1268_v2, %v1268_v2  ;;  %v781_v39 = vmul.f32 %v1748_v56, %v497_v6  ;;  %v1245_v49 = vmul.f32 %v1750_v15, %v961_v1  ;;  %1757 = vrcp.f32 %v1224_v42  ;;  %v1582_v45 = vpop.f32.mrb[8].mxu1  ;;  %v507_v23 = vpop.f32.mrb[9].mxu0 }
 0x105   : > { %vm719_vm3 = vcmp.eq.f32.partialorder %v2398_v16, 0.0  ;;  %v1299_v40 = vadd.f32 %v1298_v43, %v1284_v20  ;;  %v1271_v61 = vsub.f32 %v783_v10, %v1247_v54  ;;  %v763_v34 = vadd.f32 1e-06, %v747_v41  ;;  %v971_v57 = vpop.f32.mrb[9].mxu1 }
 0x106   : > { %v1211_v31 = vmul.f32 %v2079_v11, %v1157_v47  ;;  %v1270_v60 = vsub.f32 %v781_v39, %v1245_v49  ;;  %v746_v25 = vmul.f32 %v2081_v12, %v686_v58  ;;  %v1150_v26 = vsel %vm1148_vm14, %v1149_v28, %v2368_v36 }
 0x107   : > { %v2647_v0 = vand.u32 2147483648, %v2324_v51  ;;  %vm1176_vm4 = vcmp.eq.f32.partialorder %v2358_v17, 0.0  ;;  %v1300_v63 = vadd.f32 %v1299_v40, %v1285_v24  ;;  %v1288_v20 = vmul.f32 %v1271_v61, %v1271_v61  ;;  %v1559_v50 = vpop.f32.mrb[10].mxu0 }
 0x108   : > { %v787_v38 = vmul.f32 %v1752_v35, %v1556_v55  ;;  %1759 = vrcp.f32 %v763_v34  ;;  %v1287_v7 = vmul.f32 %v1270_v60, %v1270_v60  ;;  %v1227_v3 = vadd.f32 1e-06, %v1211_v31  ;;  %v1585_v46 = vpop.f32.mrb[10].mxu1 }
 0x109   : > { %v707_v19 = vsel %vm705_vm15, %v2647_v0, %v2470_v13  ;;  %v762_v29 = vadd.f32 1e-06, %v746_v25  ;;  %v1210_v33 = vmul.f32 %v2079_v11, %v1150_v26  ;;  %v1301_v28 = vadd.f32 %v1300_v63, %v1286_v4 }
 0x10a   : > { %v749_v36 = vmul.f32 %v2081_v12, %v707_v19  ;;  %v2648_v51 = vand.u32 2147483648, %v2322_v32  ;;  %v2649_v52 = vand.u32 2147483648, %v2278_v9  ;;  %v1754_v14 = vpop.eup %1753  ;;  %1761 = vrcp.f32 %v1227_v3  ;;  %v517_v32 = vpop.f32.mrb[11].mxu0 }
 0x10b   : > { %v1226_v41 = vadd.f32 1e-06, %v1210_v33  ;;  %v1756_v37 = vpop.eup %1755  ;;  %v1302_v22 = vadd.f32 %v1301_v28, %v1287_v7  ;;  %v1251_v42 = vmul.f32 %v1754_v14, %v1582_v45  ;;  %1763 = vrcp.f32 %v762_v29  ;;  %v1562_v6 = vpop.f32.mrb[12].mxu0 }
 0x10c   : > { %v1171_v13 = vsel %vm1169_vm1, %v2648_v51, %v2463_v59  ;;  %v700_v44 = vsel %vm698_vm0, %v2649_v52, %v2432_v27  ;;  %v981_v59 = vpop.f32.mrb[11].mxu1  ;;  %v765_v47 = vadd.f32 1e-06, %v749_v36  ;;  %v785_v58 = vmul.f32 %v1756_v37, %v507_v23  ;;  %v527_v40 = vpop.f32.mrb[13].mxu0 }
 0x10d   : > { %v1213_v56 = vmul.f32 %v2079_v11, %v1171_v13  ;;  %v748_v2 = vmul.f32 %v2081_v12, %v700_v44  ;;  %1765 = vrcp.f32 %v1226_v41  ;;  %v1273_v15 = vsub.f32 %v787_v38, %v1251_v42  ;;  %v1588_v1 = vpop.f32.mrb[12].mxu1 }
 0x10e   : > { %v1303_v43 = vadd.f32 %v1302_v22, %v1288_v20  ;;  %1767 = vrcp.f32 %v765_v47  ;;  %v2650_v4 = vand.u32 2147483648, %v2276_v8  ;;  %v1758_v54 = vpop.eup %1757  ;;  %v721_v24 = vsel %vm719_vm3, %v720_v21, %v2521_v30  ;;  %v991_v8 = vpop.f32.mrb[13].mxu1 }
 0x10f   : > { %v1229_v9 = vadd.f32 1e-06, %v1213_v56  ;;  %v764_v27 = vadd.f32 1e-06, %v748_v2  ;;  %v1231_v39 = vadd.f32 1e-06, %v2527_v62  ;;  %v1249_v49 = vmul.f32 %v1758_v54, %v971_v57 }
 0x110   : > { %v1164_v10 = vsel %vm1162_vm2, %v2650_v4, %v2424_v53  ;;  %vm712_vm5 = vcmp.eq.f32.partialorder %v2360_v18, 0.0  ;;  %v751_v53 = vmul.f32 %v2081_v12, %v721_v24  ;;  %v2651_v34 = vand.u32 2147483648, %v2360_v18  ;;  %v1565_v26 = vpop.f32.mrb[14].mxu0  ;;  %v1591_v0 = vpop.f32.mrb[14].mxu1 }
 0x111   : > { %1769 = vrcp.f32 %v1229_v9  ;;  %v1212_v35 = vmul.f32 %v2079_v11, %v1164_v10  ;;  %v2652_v16 = vand.u32 2147483648, %v2358_v17  ;;  %v1272_v62 = vsub.f32 %v785_v58, %v1249_v49  ;;  %v537_v18 = vpop.f32.mrb[15].mxu0  ;;  %v1001_v63 = vpop.f32.mrb[15].mxu1 }
 0x112   : > { %1771 = vrcp.f32 %v764_v27  ;;  %v714_v31 = vsel %vm712_vm5, %v2651_v34, %v2499_v5  ;;  %v1760_v30 = vpop.eup %1759  ;;  %v767_v60 = vadd.f32 1e-06, %v751_v53  ;;  %vm1323_vm6 = vcmask 0  }
 0x113   : > { %v1228_v61 = vadd.f32 1e-06, %v1212_v35  ;;  %1773 = vrcp.f32 %v1231_v39  ;;  %v1178_v21 = vsel %vm1176_vm4, %v2652_v16, %v2492_v48  ;;  %v750_v55 = vmul.f32 %v2081_v12, %v714_v31 }
 0x114   : > { %v1214_v45 = vmul.f32 %v2079_v11, %v1178_v21  ;;  %v791_v25 = vmul.f32 %v1760_v30, %v1559_v50  ;;  %v1289_v19 = vmul.f32 %v1272_v62, %v1272_v62  ;;  %v1762_v38 = vpop.eup %1761  ;;  %v1290_v48 = vmul.f32 %v1273_v15, %v1273_v15  ;;  %v1280_v21 = vld [vmem:[#allocation2] sm:$0x1] }
 0x115   : > { %1775 = vrcp.f32 %v1228_v61  ;;  %v766_v5 = vadd.f32 1e-06, %v750_v55  ;;  %v1764_v17 = vpop.eup %1763  ;;  %v1255_v57 = vmul.f32 %v1762_v38, %v1585_v46 }
 0x116   : > { %1777 = vrcp.f32 %v767_v60  ;;  %v1230_v20 = vadd.f32 1e-06, %v1214_v45  ;;  %v1304_v23 = vadd.f32 %v1303_v43, %v1289_v19  ;;  %v789_v12 = vmul.f32 %v1764_v17, %v517_v32 }
 0x117   : > { %1779 = vrcp.f32 %v766_v5  ;;  %v1766_v7 = vpop.eup %1765  ;;  %v1275_v3 = vsub.f32 %v791_v25, %v1255_v57 }
 0x118   : > { %1781 = vrcp.f32 %v1230_v20  ;;  %v1768_v11 = vpop.eup %1767  ;;  %v1253_v29 = vmul.f32 %v1766_v7, %v981_v59  ;;  %v1305_v33 = vadd.f32 %v1304_v23, %v1290_v48 }
 0x119   : > { %v795_v36 = vmul.f32 %v1768_v11, %v1562_v6  ;;  %v1292_v37 = vmul.f32 %v1275_v3, %v1275_v3 }
 0x11a   : > { %v1274_v13 = vsub.f32 %v789_v12, %v1253_v29 }
 0x11b   : > { %v1770_v28 = vpop.eup %1769 }
 0x11c   : > { %v1772_v51 = vpop.eup %1771  ;;  %v1259_v52 = vmul.f32 %v1770_v28, %v1588_v1  ;;  %v1291_v50 = vmul.f32 %v1274_v13, %v1274_v13 }
 0x11d   : > { %v1774_v44 = vpop.eup %1773  ;;  %v793_v14 = vmul.f32 %v1772_v51, %v527_v40 }
 0x11e   : > { %v1277_v41 = vsub.f32 %v795_v36, %v1259_v52  ;;  %v1263_v56 = vmul.f32 %v1774_v44, %v1591_v0  ;;  %v1306_v22 = vadd.f32 %v1305_v33, %v1291_v50 }
 0x11f   : > { %v1776_v2 = vpop.eup %1775 }
 0x120   : > { %v1778_v46 = vpop.eup %1777  ;;  %v1257_v42 = vmul.f32 %v1776_v2, %v991_v8  ;;  %v1307_v59 = vadd.f32 %v1306_v22, %v1292_v37  ;;  %v1294_v10 = vmul.f32 %v1277_v41, %v1277_v41 }
 0x121   : > { %v799_v32 = vmul.f32 %v1778_v46, %v1565_v26  ;;  %v1780_v47 = vpop.eup %1779 }
 0x122   : > { %v1276_v58 = vsub.f32 %v793_v14, %v1257_v42  ;;  %v1782_v9 = vpop.eup %1781  ;;  %v797_v15 = vmul.f32 %v1780_v47, %v537_v18 }
 0x123   : > { %v1279_v27 = vsub.f32 %v799_v32, %v1263_v56  ;;  %v1261_v4 = vmul.f32 %v1782_v9, %v1001_v63 }
 0x124   : > { %v1293_v43 = vmul.f32 %v1276_v58, %v1276_v58 }
 0x125   : > { %v1278_v6 = vsub.f32 %v797_v15, %v1261_v4  ;;  %v1296_v24 = vmul.f32 %v1279_v27, %v1279_v27 }
 0x126   : > { %v1308_v54 = vadd.f32 %v1307_v59, %v1293_v43 }
 0x127   : > { %v1295_v1 = vmul.f32 %v1278_v6, %v1278_v6 }
 0x128   : > { %v1309_v35 = vadd.f32 %v1308_v54, %v1294_v10 }
 0x12a   : > { %v1310_v39 = vadd.f32 %v1309_v35, %v1295_v1 }
 0x12c   : > { %v1311_v49 = vadd.f32 %v1310_v39, %v1296_v24 }
 0x12e   : > { %1312 = vadd.xlane.f32.xlu0 %v1311_v49 }
 0x1bb   : > { %v1313_v40 = vpop.xlane.xlu0 %1312 }
 0x1bc   : > { %v1314_v8 = vrot.slane %v1313_v40, 4 }
 0x1be   : > { %v1315_v53 = vadd.f32 %v1314_v8, %v1313_v40 }
 0x1c0   : > { %v1316_v61 = vrot.slane %v1315_v53, 2 }
 0x1c2   : > { %v1317_v34 = vadd.f32 %v1316_v61, %v1315_v53 }
 0x1c4   : > { %v1318_v31 = vrot.slane %v1317_v34, 1 }
 0x1c6   : > { %v1319_v16 = vadd.f32 %v1318_v31, %v1317_v34 }
 0x1c8   : > { %1592 = vpush %v1319_v16 }
 0x1f7   : > { %1330 = sbr.rel (%p2610_p0) target bundleno = 518 (0x206), region = 44 }
 0x1f9   : > { %s1593_s5 = spop %1592 }
 0x1fa   : > { %v1321_v30 = vstv %s1593_s5 }
 0x1fb   : > { %v1322_v62 = vadd.f32 %v1321_v30, %v1280_v21 }
 0x1fd   : > { %1324 = vst.msk [vmem:[#allocation2] sm:$0x1] %vm1323_vm6, %v1322_v62 }
 0x204   : > { %v1331_v60 = vld [vmem:[#allocation2] sm:$0x1] }
 0x205   : > { %1332 = vst.msk [vmem:[%s2654_s6] sm:$0x1] %vm1323_vm6, %v1331_v60 }
 0x206 PF: > { %s14_s21 = sadd.s32 1, %s1837_s21   ;;  %s2655_s15 = smov %s1825_s18 }
 0x207   : > { %p11_p1 = scmp.ge.s32.totalorder %s14_s21, 10   ;;  %s2656_s16 = smov %s1829_s19 }
 0x208   : > { %s2657_s17 = smov %s1833_s20  ;;  %s2658_s18 = smov %s2662_s22 }
 0x209   : > { %s2659_s19 = smov %s2666_s23  ;;  %s2660_s20 = smov %s2670_s24 }
 0x20a   :  { %13 = sbr.rel (!%p11_p1) target bundleno = 4 (0x4), region = 83 }

</bundles_post_ra>
